<compile_context>
chip_gen: v7x
topology: tpu7x:2x2x1
jax: 0.10.0
libtpu: 0.0.40
codegen_flags: <defaults>
</compile_context>

<pallas_src>
import functools

import jax
import jax.numpy as jnp
import numpy as np
from jax import lax
from jax.experimental import pallas as pl
from jax.experimental.pallas import tpu as pltpu


# ----------------------------- configuration -------------------------------
FILTERS = (3, 4, 5)      # args.filters
FILTER_NUM = 16          # args.filter_num
HIDDEN_DIM = 32          # args.hidden_dim
NUM_CLASS = 2            # args.num_class
VOCAB = 50
EMB_DIM = 32             # embeddings.shape[1]
BATCH = 2
SEQ = 16
OUT_W = 128              # lane-dense fused output width: [hidden | logit_pad | 0]
NEG_BIG = -1e9           # pre-ReLU offset that zeroes invalid conv rows


# ------------------------------- kernel ------------------------------------
def _encoder_kernel(TB, S, filters, filter_num, hidden_dim, num_class,
                    idxmask_ref, wemb_ref, wconv_ref, whead_ref, misc_ref,
                    out_ref):
    del num_class  # classifier columns are zero-padded to hidden_dim
    nf = len(filters)
    F = filter_num
    k_max = max(filters)
    k_min = min(filters)
    s_out = S - k_min + 1
    vocab, H = wemb_ref.shape
    BS = TB * S

    # ---- embedding gather + rationale mask + embedding_fc: ONE MXU matmul ---
    # wemb_ref holds W = emb @ w_fc (precomposed, bf16); mask folded into the
    # exact one-hot:  relu((onehot*mask) @ W + b_fc) == relu((emb[idx]*mask) @ w_fc + b_fc)
    iw = idxmask_ref[...]                                        # (BS, 2) f32
    idx = iw[:, 0:1].astype(jnp.int32)                           # exact small ints
    msk = iw[:, 1:2]
    vocab_iota = lax.broadcasted_iota(jnp.int32, (BS, vocab), 1)
    onehot = jnp.where(vocab_iota == idx, msk, 0.0).astype(jnp.bfloat16)
    y = jnp.dot(onehot, wemb_ref[...], preferred_element_type=jnp.float32)
    y = jnp.maximum(y + misc_ref[0:1, 0:H], 0.0)                 # (BS, H) f32
    yb = y.astype(jnp.bfloat16)
    # dropout -> identity (eval); embedding_bn is unused in forward.

    # ---- text-CNN (all filter sizes fused): k_max accumulating matmuls -----
    # conv[b, s, g*F+f] = sum_{j<k_g} sum_h y[b, s+j, h] * Wg[j, h, f]
    y3 = yb.reshape(TB, S, H)
    pad = k_max - k_min
    if pad > 0:
        y3 = jnp.concatenate([y3, jnp.zeros((TB, pad, H), jnp.bfloat16)],
                             axis=1)                             # (TB, S+pad, H)
    conv = jnp.zeros((TB * s_out, nf * F), jnp.float32)
    for j in range(k_max):
        xj = y3[:, j:j + s_out, :].reshape(TB * s_out, H)
        conv = conv + jnp.dot(xj, wconv_ref[j * H:(j + 1) * H, :],
                              preferred_element_type=jnp.float32)
    # misc rows 1.. hold the conv bias with NEG_BIG on rows past each filter's
    # valid output length -> ReLU zeroes them -> they drop out of the max-pool
    # (correct because valid post-ReLU values are >= 0).
    bconv = misc_ref[1:1 + s_out, 0:nf * F]                      # (s_out, nf*F)
    conv = jnp.maximum(conv.reshape(TB, s_out, nf * F) + bconv[None, :, :], 0.0)
    feat = jnp.max(conv, axis=1)                                 # (TB, nf*F)

    # ---- hidden = relu(fc(feat)); logit = classifier(hidden) ---------------
    hidden = jnp.dot(feat.astype(jnp.bfloat16), whead_ref[0:nf * F, :],
                     preferred_element_type=jnp.float32)
    hidden = jnp.maximum(hidden + misc_ref[0:1, H:H + hidden_dim], 0.0)
    logit = jnp.dot(hidden.astype(jnp.bfloat16),
                    whead_ref[nf * F:nf * F + hidden_dim, :],
                    preferred_element_type=jnp.float32)
    logit = logit + misc_ref[0:1, H + hidden_dim:H + 2 * hidden_dim]

    # ---- single lane-dense store: [hidden | logit (padded) | zeros] --------
    pad_w = out_ref.shape[-1] - 2 * hidden_dim
    out_ref[...] = jnp.concatenate(
        [hidden, logit, jnp.zeros((TB, pad_w), jnp.float32)], axis=-1)


# ------------------------------ wrapper -------------------------------------
def encoder_forward(params, x_indx, mask):
    """x_indx: (B, 1, S) int32 word indices; mask: (B, S) float32."""
    B, _, S = x_indx.shape
    H = EMB_DIM
    nf, F = len(FILTERS), FILTER_NUM
    k_max, k_min = max(FILTERS), min(FILTERS)
    s_out = S - k_min + 1
    assert H + 2 * HIDDEN_DIM <= OUT_W and nf * F <= OUT_W

    # ---- one-time weight preprocessing (packed, bf16 MXU operands) ---------
    # precompose gather + embedding_fc (f32 matmul, single bf16 cast)
    w_emb = jnp.dot(params['emb'], params['w_fc']).astype(jnp.bfloat16)  # (V, H)

    # conv weights: per-filter (k, H, F) -> single (k_max*H, nf*F), zero-padded
    wconv_blocks = []
    for j in range(k_max):
        cols = [params[f'w_conv{k}'][j] if j < k
                else jnp.zeros((H, F), jnp.float32) for k in FILTERS]
        wconv_blocks.append(jnp.concatenate(cols, axis=-1))      # (H, nf*F)
    w_conv = jnp.concatenate(wconv_blocks, axis=0).astype(jnp.bfloat16)

    # head weights: [w_out ; w_cls zero-padded to hidden_dim cols]
    w_cls_pad = jnp.pad(params['w_cls'], ((0, 0), (0, HIDDEN_DIM - NUM_CLASS)))
    w_head = jnp.concatenate([params['w_out'], w_cls_pad],
                             axis=0).astype(jnp.bfloat16)        # (nf*F+HID, HID)

    # misc f32 slab (1 + s_out, 128):
    #   row 0:   [b_fc | b_out | b_cls padded | 0...]
    #   rows 1.: conv bias, with NEG_BIG on rows past each filter's valid length
    row0 = jnp.concatenate([
        params['b_fc'].reshape(1, H),
        params['b_out'].reshape(1, HIDDEN_DIM),
        jnp.pad(params['b_cls'].reshape(1, NUM_CLASS),
                ((0, 0), (0, HIDDEN_DIM - NUM_CLASS))),
        jnp.zeros((1, OUT_W - H - 2 * HIDDEN_DIM), jnp.float32)], axis=1)
    b_conv = jnp.concatenate(
        [params[f'b_conv{k}'].reshape(1, F) for k in FILTERS], axis=1)  # (1, nf*F)
    valid = np.zeros((s_out, nf * F), dtype=bool)                # static, shape-only
    for g, k in enumerate(FILTERS):
        valid[:S - k + 1, g * F:(g + 1) * F] = True
    conv_rows = jnp.where(jnp.asarray(valid),
                          jnp.broadcast_to(b_conv, (s_out, nf * F)),
                          jnp.float32(NEG_BIG))
    conv_rows = jnp.pad(conv_rows, ((0, 0), (0, OUT_W - nf * F)))
    misc = jnp.concatenate([row0, conv_rows], axis=0)            # (1+s_out, 128)

    # ---- per-example inputs: indices and mask packed into one f32 array ----
    idx_f = jnp.squeeze(x_indx, axis=1).astype(jnp.float32).reshape(B * S, 1)
    msk_f = mask.astype(jnp.float32).reshape(B * S, 1)
    idxmask = jnp.concatenate([idx_f, msk_f], axis=-1)           # (B*S, 2)

    # batch-tiled grid; at production batch this feeds both v7x TensorCores.
    # TODO(synk): at production batch, raise TB so each MXU call sees M>=256
    # on v6e/v7x (128 on v5e) and re-derive VMEM budget for v7x's 64 MiB.
    TB = B if B <= 8 else 8
    assert B % TB == 0
    grid = (B // TB,)

    flops = 2 * grid[0] * (TB * S * VOCAB * H
                           + k_max * TB * s_out * H * nf * F
                           + TB * nf * F * HIDDEN_DIM
                           + TB * HIDDEN_DIM * HIDDEN_DIM)
    inputs = [idxmask, w_emb, w_conv, w_head, misc]
    bytes_accessed = sum(int(np.prod(a.shape)) * a.dtype.itemsize
                         for a in inputs) + B * OUT_W * 4

    kernel = functools.partial(_encoder_kernel, TB, S, FILTERS, FILTER_NUM,
                               HIDDEN_DIM, NUM_CLASS)

    out = pl.pallas_call(
        kernel,
        out_shape=jax.ShapeDtypeStruct((B, OUT_W), jnp.float32),
        grid=grid,
        in_specs=[
            pl.BlockSpec((TB * S, 2), lambda i: (i, 0)),
            pl.BlockSpec(w_emb.shape, lambda i: (0, 0)),
            pl.BlockSpec(w_conv.shape, lambda i: (0, 0)),
            pl.BlockSpec(w_head.shape, lambda i: (0, 0)),
            pl.BlockSpec(misc.shape, lambda i: (0, 0)),
        ],
        out_specs=pl.BlockSpec((TB, OUT_W), lambda i: (i, 0)),
        compiler_params=pltpu.CompilerParams(
            dimension_semantics=("parallel",),
            vmem_limit_bytes=32 * 1024 * 1024),
        cost_estimate=pl.CostEstimate(flops=int(flops), transcendentals=0,
                                      bytes_accessed=int(bytes_accessed)),
    )(*inputs)

    hidden = out[:, :HIDDEN_DIM]
    logit = out[:, HIDDEN_DIM:HIDDEN_DIM + NUM_CLASS]
    return logit, hidden


# --------------------------- reference (plain JAX, f32) ----------------------
def encoder_reference(params, x_indx, mask):
    x_idx = jnp.squeeze(x_indx, axis=1)
    x = jnp.take(params['emb'], x_idx, axis=0).astype(jnp.float32)
    x = x * mask[:, :, None]
    x = jax.nn.relu(jnp.einsum('bsh,hd->bsd', x, params['w_fc']) + params['b_fc'])
    feats = []
    S = x.shape[1]
    for k in FILTERS:
        w = params[f'w_conv{k}']; b = params[f'b_conv{k}']
        s_out = S - k + 1
        acc = sum(jnp.einsum('bsh,hf->bsf', x[:, j:j + s_out, :], w[j])
                  for j in range(k))
        acc = jax.nn.relu(acc + b[None, :, :])
        feats.append(jnp.max(acc, axis=1))
    feat = jnp.concatenate(feats, axis=-1)
    hidden = jax.nn.relu(jnp.dot(feat, params['w_out']) + params['b_out'])
    logit = jnp.dot(hidden, params['w_cls']) + params['b_cls']
    return logit, hidden


# ------------------------------ param init ----------------------------------
def init_params(key):
    ks = jax.random.split(key, 12)
    p = {}
    p['emb'] = jax.random.normal(ks[0], (VOCAB, EMB_DIM), jnp.float32) * 0.1
    # embedding_fc: Linear(H, H); stored transposed (in, out)
    p['w_fc'] = jax.random.normal(ks[1], (EMB_DIM, EMB_DIM), jnp.float32) * 0.1
    p['b_fc'] = jax.random.normal(ks[2], (1, EMB_DIM), jnp.float32) * 0.1
    # conv weights: PyTorch Conv1d weight (F, H, k) -> stored (k, H, F)
    for i, k in enumerate(FILTERS):
        p[f'w_conv{k}'] = jax.random.normal(
            ks[3 + i], (k, EMB_DIM, FILTER_NUM), jnp.float32) * 0.1
        p[f'b_conv{k}'] = jax.random.normal(
            ks[6 + i], (1, FILTER_NUM), jnp.float32) * 0.1
    # fc: Linear(len(filters)*filter_num, hidden_dim)
    p['w_out'] = jax.random.normal(
        ks[9], (len(FILTERS) * FILTER_NUM, HIDDEN_DIM), jnp.float32) * 0.1
    p['b_out'] = jax.random.normal(ks[10], (1, HIDDEN_DIM), jnp.float32) * 0.1
    # hidden: Linear(hidden_dim, num_class)
    p['w_cls'] = jax.random.normal(
        ks[11], (HIDDEN_DIM, NUM_CLASS), jnp.float32) * 0.1
    p['b_cls'] = jnp.zeros((1, NUM_CLASS), jnp.float32)
    return p


# --------------------------------- main --------------------------------------
if __name__ == "__main__":
    key = jax.random.PRNGKey(0)
    kp, kx = jax.random.split(key)
    params = init_params(kp)

    # word indices, some zeros (padding id 0); shape (B, 1, S) like the module
    x_indx = jax.random.randint(kx, (BATCH, 1, SEQ), 0, VOCAB, dtype=jnp.int32)
    mask = (jnp.squeeze(x_indx, axis=1) != 0).astype(jnp.float32)  # (B, S)

    logit, hidden = encoder_forward(params, x_indx, mask)
    jax.block_until_ready((logit, hidden))

    ref_logit, ref_hidden = encoder_reference(params, x_indx, mask)
    assert logit.shape == (BATCH, NUM_CLASS) and hidden.shape == (BATCH, HIDDEN_DIM)
    # Tolerance covers bf16 MXU operands (f32 accumulation) vs. the f32 reference.
    np.testing.assert_allclose(np.asarray(logit), np.asarray(ref_logit),
                               atol=3e-2, rtol=3e-2)
    np.testing.assert_allclose(np.asarray(hidden), np.asarray(ref_hidden),
                               atol=3e-2, rtol=3e-2)
    print("KERNEL_OK")
</pallas_src>

<mosaic_0001>
module attributes {stable_mosaic.version = 11 : i64} {
  func.func @_encoder_kernel(%arg0: i32, %arg1: memref<32x2xf32, #tpu.memory_space<vmem>>, %arg2: memref<50x32xbf16, #tpu.memory_space<vmem>>, %arg3: memref<160x48xbf16, #tpu.memory_space<vmem>>, %arg4: memref<80x32xbf16, #tpu.memory_space<vmem>>, %arg5: memref<15x128xf32, #tpu.memory_space<vmem>>, %arg6: memref<2x128xf32, #tpu.memory_space<vmem>>) attributes {dimension_semantics = [#tpu.dimension_semantics<parallel>], iteration_bounds = array<i64: 1>, scalar_prefetch = 0 : i64, scratch_operands = 0 : i64, tpu.core_type = #tpu.core_type<tc>, window_params = [{transform_indices = @transform_0, window_bounds = array<i64: 32, 2>}, {pipeline_mode = #tpu.pipeline_mode<synchronous>, transform_indices = @transform_1, window_bounds = array<i64: 50, 32>}, {pipeline_mode = #tpu.pipeline_mode<synchronous>, transform_indices = @transform_2, window_bounds = array<i64: 160, 48>}, {pipeline_mode = #tpu.pipeline_mode<synchronous>, transform_indices = @transform_3, window_bounds = array<i64: 80, 32>}, {pipeline_mode = #tpu.pipeline_mode<synchronous>, transform_indices = @transform_4, window_bounds = array<i64: 15, 128>}, {transform_indices = @transform_5, window_bounds = array<i64: 2, 128>}]} {
    %c0 = arith.constant 0 : index
    %c0_0 = arith.constant 0 : index
    %0 = vector.load %arg1[%c0, %c0_0] : memref<32x2xf32, #tpu.memory_space<vmem>>, vector<32x2xf32>
    %1 = vector.extract_strided_slice %0 {offsets = [0, 0], sizes = [32, 1], strides = [1, 1]} : vector<32x2xf32> to vector<32x1xf32>
    %2 = arith.fptosi %1 : vector<32x1xf32> to vector<32x1xi32>
    %3 = vector.extract_strided_slice %0 {offsets = [0, 1], sizes = [32, 1], strides = [1, 1]} : vector<32x2xf32> to vector<32x1xf32>
    %4 = tpu.iota {dimensions = array<i32: 1>} : vector<32x50xi32>
    %5 = vector.broadcast %2 : vector<32x1xi32> to vector<32x50xi32>
    %6 = arith.cmpi eq, %4, %5 : vector<32x50xi32>
    %cst = arith.constant 0.000000e+00 : f32
    %7 = vector.shape_cast %3 : vector<32x1xf32> to vector<32x1xf32>
    %8 = vector.broadcast %7 : vector<32x1xf32> to vector<32x50xf32>
    %9 = vector.broadcast %cst : f32 to vector<32x50xf32>
    %10 = arith.select %6, %8, %9 : vector<32x50xi1>, vector<32x50xf32>
    %11 = arith.truncf %10 : vector<32x50xf32> to vector<32x50xbf16>
    %c0_1 = arith.constant 0 : index
    %c0_2 = arith.constant 0 : index
    %12 = vector.load %arg2[%c0_1, %c0_2] : memref<50x32xbf16, #tpu.memory_space<vmem>>, vector<50x32xbf16>
    %cst_3 = arith.constant dense<0.000000e+00> : vector<32x32xf32>
    %13 = tpu.matmul %11, %12, %cst_3 {dimension_numbers = #tpu.dot_dimension_numbers<[1], [0], [0], [1], [0, 0, 1, 1], [], []>} : vector<32x50xbf16>, vector<50x32xbf16>, vector<32x32xf32> -> vector<32x32xf32>
    %c0_4 = arith.constant 0 : index
    %c0_5 = arith.constant 0 : index
    %14 = vector.load %arg5[%c0_4, %c0_5] : memref<15x128xf32, #tpu.memory_space<vmem>>, vector<1x32xf32>
    %15 = vector.broadcast %14 : vector<1x32xf32> to vector<32x32xf32>
    %16 = arith.addf %13, %15 : vector<32x32xf32>
    %cst_6 = arith.constant 0.000000e+00 : f32
    %17 = vector.broadcast %cst_6 : f32 to vector<32x32xf32>
    %18 = arith.maximumf %16, %17 : vector<32x32xf32>
    %19 = arith.truncf %18 : vector<32x32xf32> to vector<32x32xbf16>
    %20 = vector.shape_cast %19 : vector<32x32xbf16> to vector<2x16x32xbf16>
    %cst_7 = arith.constant 0.000000e+00 : bf16
    %21 = vector.broadcast %cst_7 : bf16 to vector<2x2x32xbf16>
    %22 = tpu.concatenate %20, %21 in 1 : vector<2x16x32xbf16>, vector<2x2x32xbf16> -> vector<2x18x32xbf16>
    %cst_8 = arith.constant 0.000000e+00 : f32
    %23 = vector.broadcast %cst_8 : f32 to vector<28x48xf32>
    %24 = vector.extract_strided_slice %22 {offsets = [0, 0, 0], sizes = [2, 14, 32], strides = [1, 1, 1]} : vector<2x18x32xbf16> to vector<2x14x32xbf16>
    %25 = vector.shape_cast %24 : vector<2x14x32xbf16> to vector<28x32xbf16>
    %c0_9 = arith.constant 0 : index
    %c0_10 = arith.constant 0 : index
    %26 = vector.load %arg3[%c0_9, %c0_10] : memref<160x48xbf16, #tpu.memory_space<vmem>>, vector<32x48xbf16>
    %cst_11 = arith.constant dense<0.000000e+00> : vector<28x48xf32>
    %27 = tpu.matmul %25, %26, %cst_11 {dimension_numbers = #tpu.dot_dimension_numbers<[1], [0], [0], [1], [0, 0, 1, 1], [], []>} : vector<28x32xbf16>, vector<32x48xbf16>, vector<28x48xf32> -> vector<28x48xf32>
    %28 = arith.addf %23, %27 : vector<28x48xf32>
    %29 = vector.extract_strided_slice %22 {offsets = [0, 1, 0], sizes = [2, 14, 32], strides = [1, 1, 1]} : vector<2x18x32xbf16> to vector<2x14x32xbf16>
    %30 = vector.shape_cast %29 : vector<2x14x32xbf16> to vector<28x32xbf16>
    %c32 = arith.constant 32 : index
    %c0_12 = arith.constant 0 : index
    %31 = vector.load %arg3[%c32, %c0_12] : memref<160x48xbf16, #tpu.memory_space<vmem>>, vector<32x48xbf16>
    %cst_13 = arith.constant dense<0.000000e+00> : vector<28x48xf32>
    %32 = tpu.matmul %30, %31, %cst_13 {dimension_numbers = #tpu.dot_dimension_numbers<[1], [0], [0], [1], [0, 0, 1, 1], [], []>} : vector<28x32xbf16>, vector<32x48xbf16>, vector<28x48xf32> -> vector<28x48xf32>
    %33 = arith.addf %28, %32 : vector<28x48xf32>
    %34 = vector.extract_strided_slice %22 {offsets = [0, 2, 0], sizes = [2, 14, 32], strides = [1, 1, 1]} : vector<2x18x32xbf16> to vector<2x14x32xbf16>
    %35 = vector.shape_cast %34 : vector<2x14x32xbf16> to vector<28x32xbf16>
    %c64 = arith.constant 64 : index
    %c0_14 = arith.constant 0 : index
    %36 = vector.load %arg3[%c64, %c0_14] : memref<160x48xbf16, #tpu.memory_space<vmem>>, vector<32x48xbf16>
    %cst_15 = arith.constant dense<0.000000e+00> : vector<28x48xf32>
    %37 = tpu.matmul %35, %36, %cst_15 {dimension_numbers = #tpu.dot_dimension_numbers<[1], [0], [0], [1], [0, 0, 1, 1], [], []>} : vector<28x32xbf16>, vector<32x48xbf16>, vector<28x48xf32> -> vector<28x48xf32>
    %38 = arith.addf %33, %37 : vector<28x48xf32>
    %39 = vector.extract_strided_slice %22 {offsets = [0, 3, 0], sizes = [2, 14, 32], strides = [1, 1, 1]} : vector<2x18x32xbf16> to vector<2x14x32xbf16>
    %40 = vector.shape_cast %39 : vector<2x14x32xbf16> to vector<28x32xbf16>
    %c96 = arith.constant 96 : index
    %c0_16 = arith.constant 0 : index
    %41 = vector.load %arg3[%c96, %c0_16] : memref<160x48xbf16, #tpu.memory_space<vmem>>, vector<32x48xbf16>
    %cst_17 = arith.constant dense<0.000000e+00> : vector<28x48xf32>
    %42 = tpu.matmul %40, %41, %cst_17 {dimension_numbers = #tpu.dot_dimension_numbers<[1], [0], [0], [1], [0, 0, 1, 1], [], []>} : vector<28x32xbf16>, vector<32x48xbf16>, vector<28x48xf32> -> vector<28x48xf32>
    %43 = arith.addf %38, %42 : vector<28x48xf32>
    %44 = vector.extract_strided_slice %22 {offsets = [0, 4, 0], sizes = [2, 14, 32], strides = [1, 1, 1]} : vector<2x18x32xbf16> to vector<2x14x32xbf16>
    %45 = vector.shape_cast %44 : vector<2x14x32xbf16> to vector<28x32xbf16>
    %c128 = arith.constant 128 : index
    %c0_18 = arith.constant 0 : index
    %46 = vector.load %arg3[%c128, %c0_18] : memref<160x48xbf16, #tpu.memory_space<vmem>>, vector<32x48xbf16>
    %cst_19 = arith.constant dense<0.000000e+00> : vector<28x48xf32>
    %47 = tpu.matmul %45, %46, %cst_19 {dimension_numbers = #tpu.dot_dimension_numbers<[1], [0], [0], [1], [0, 0, 1, 1], [], []>} : vector<28x32xbf16>, vector<32x48xbf16>, vector<28x48xf32> -> vector<28x48xf32>
    %48 = arith.addf %43, %47 : vector<28x48xf32>
    %c1 = arith.constant 1 : index
    %c0_20 = arith.constant 0 : index
    %49 = vector.load %arg5[%c1, %c0_20] : memref<15x128xf32, #tpu.memory_space<vmem>>, vector<14x48xf32>
    %50 = vector.shape_cast %48 : vector<28x48xf32> to vector<2x14x48xf32>
    %51 = vector.shape_cast %49 : vector<14x48xf32> to vector<1x14x48xf32>
    %52 = vector.broadcast %51 : vector<1x14x48xf32> to vector<2x14x48xf32>
    %53 = arith.addf %50, %52 : vector<2x14x48xf32>
    %cst_21 = arith.constant 0.000000e+00 : f32
    %54 = vector.broadcast %cst_21 : f32 to vector<2x14x48xf32>
    %55 = arith.maximumf %53, %54 : vector<2x14x48xf32>
    %cst_22 = arith.constant dense<0xFF800000> : vector<2x48xf32>
    %56 = vector.multi_reduction <maximumf>, %55, %cst_22 [1] : vector<2x14x48xf32> to vector<2x48xf32>
    %57 = arith.truncf %56 : vector<2x48xf32> to vector<2x48xbf16>
    %c0_23 = arith.constant 0 : index
    %c0_24 = arith.constant 0 : index
    %58 = vector.load %arg4[%c0_23, %c0_24] : memref<80x32xbf16, #tpu.memory_space<vmem>>, vector<48x32xbf16>
    %cst_25 = arith.constant dense<0.000000e+00> : vector<2x32xf32>
    %59 = tpu.matmul %57, %58, %cst_25 {dimension_numbers = #tpu.dot_dimension_numbers<[1], [0], [0], [1], [0, 0, 1, 1], [], []>} : vector<2x48xbf16>, vector<48x32xbf16>, vector<2x32xf32> -> vector<2x32xf32>
    %c0_26 = arith.constant 0 : index
    %c32_27 = arith.constant 32 : index
    %60 = vector.load %arg5[%c0_26, %c32_27] : memref<15x128xf32, #tpu.memory_space<vmem>>, vector<1x32xf32>
    %61 = vector.broadcast %60 : vector<1x32xf32> to vector<2x32xf32>
    %62 = arith.addf %59, %61 : vector<2x32xf32>
    %cst_28 = arith.constant 0.000000e+00 : f32
    %63 = vector.broadcast %cst_28 : f32 to vector<2x32xf32>
    %64 = arith.maximumf %62, %63 : vector<2x32xf32>
    %65 = arith.truncf %64 : vector<2x32xf32> to vector<2x32xbf16>
    %c48 = arith.constant 48 : index
    %c0_29 = arith.constant 0 : index
    %66 = vector.load %arg4[%c48, %c0_29] : memref<80x32xbf16, #tpu.memory_space<vmem>>, vector<32x32xbf16>
    %cst_30 = arith.constant dense<0.000000e+00> : vector<2x32xf32>
    %67 = tpu.matmul %65, %66, %cst_30 {dimension_numbers = #tpu.dot_dimension_numbers<[1], [0], [0], [1], [0, 0, 1, 1], [], []>} : vector<2x32xbf16>, vector<32x32xbf16>, vector<2x32xf32> -> vector<2x32xf32>
    %c0_31 = arith.constant 0 : index
    %c64_32 = arith.constant 64 : index
    %68 = vector.load %arg5[%c0_31, %c64_32] : memref<15x128xf32, #tpu.memory_space<vmem>>, vector<1x32xf32>
    %69 = vector.broadcast %68 : vector<1x32xf32> to vector<2x32xf32>
    %70 = arith.addf %67, %69 : vector<2x32xf32>
    %cst_33 = arith.constant 0.000000e+00 : f32
    %71 = vector.broadcast %cst_33 : f32 to vector<2x64xf32>
    %72 = tpu.concatenate %64, %70, %71 in 1 : vector<2x32xf32>, vector<2x32xf32>, vector<2x64xf32> -> vector<2x128xf32>
    %c0_34 = arith.constant 0 : index
    %c0_35 = arith.constant 0 : index
    %73 = vector.load %arg6[%c0_34, %c0_35] : memref<2x128xf32, #tpu.memory_space<vmem>>, vector<2x128xf32>
    tpu.vector_store %arg6[%c0_34, %c0_35], %72 {strides = array<i32>} : memref<2x128xf32, #tpu.memory_space<vmem>>, vector<2x128xf32>,
    return
  }
  func.func @transform_0(%arg0: i32) -> (i32, i32) {
    %c0_i32 = arith.constant 0 : i32
    %c0_i32_0 = arith.constant 0 : i32
    return %arg0, %c0_i32 : i32, i32
  }
  func.func @transform_1(%arg0: i32) -> (i32, i32) {
    %c0_i32 = arith.constant 0 : i32
    %c0_i32_0 = arith.constant 0 : i32
    %c0_i32_1 = arith.constant 0 : i32
    return %c0_i32, %c0_i32_0 : i32, i32
  }
  func.func @transform_2(%arg0: i32) -> (i32, i32) {
    %c0_i32 = arith.constant 0 : i32
    %c0_i32_0 = arith.constant 0 : i32
    %c0_i32_1 = arith.constant 0 : i32
    return %c0_i32, %c0_i32_0 : i32, i32
  }
  func.func @transform_3(%arg0: i32) -> (i32, i32) {
    %c0_i32 = arith.constant 0 : i32
    %c0_i32_0 = arith.constant 0 : i32
    %c0_i32_1 = arith.constant 0 : i32
    return %c0_i32, %c0_i32_0 : i32, i32
  }
  func.func @transform_4(%arg0: i32) -> (i32, i32) {
    %c0_i32 = arith.constant 0 : i32
    %c0_i32_0 = arith.constant 0 : i32
    %c0_i32_1 = arith.constant 0 : i32
    return %c0_i32, %c0_i32_0 : i32, i32
  }
  func.func @transform_5(%arg0: i32) -> (i32, i32) {
    %c0_i32 = arith.constant 0 : i32
    %c0_i32_0 = arith.constant 0 : i32
    return %arg0, %c0_i32 : i32, i32
  }
}

</mosaic_0001>

<bundles_post_ra>
// kernel: tpu_custom_call.1
= control target key start
LH: loop header
LB: loop body
LE: loop exit
PB: predicated region body
PF: predicated region fallthrough
CT: control target
= control target key end

     0   :  { %v1889_v3 = vmov 0   ;;  %v1890_v18 = vmov 1   ;;  %vm114_vm0 = vcmask 1040384   ;;  %s2381_s0 = inlined_call_operand.vmem [shape: f32[32,2], index: 0, kind: input, shape index: {}]   ;;  %s2382_s1 = inlined_call_operand.vmem [shape: bf16[50,32], index: 1, kind: input, shape index: {}]   ;;  %s2383_s2 = inlined_call_operand.vmem [shape: bf16[160,48], index: 2, kind: input, shape index: {}]   ;;  %s2384_s3 = inlined_call_operand.vmem [shape: bf16[80,32], index: 3, kind: input, shape index: {}]   ;;  %s2385_s4 = inlined_call_operand.vmem [shape: f32[15,128], index: 4, kind: input, shape index: {}]   ;;  %s2386_s5 = inlined_call_operand.hbm [shape: f32[2,128], index: 5, kind: output, shape index: {}]  }
   0x1   :  { %v24_v0 = vld [vmem:[%s2381_s0 + $0x10] sm:$0xff]  ;;  %v22_v1 = vld [vmem:[%s2381_s0] sm:$0xff]  ;;  %v25_v2 = vld [vmem:[%s2381_s0 + $0x18] sm:$0xff]  ;;  %1837 = vset.pattern.permute.xlu1 %v1889_v3  ;;  %1830 = vset.pattern.permute.xlu0 %v1889_v3 }
   0x2   :  { %v1816_v4 = vtrunc.f32 %v24_v0  ;;  %v1812_v5 = vtrunc.f32 %v22_v1  ;;  %v1818_v6 = vtrunc.f32 %v25_v2  ;;  %v23_v7 = vld [vmem:[%s2381_s0 + $0x8] sm:$0xff]  ;;  %v1844_v9 = vld [vmem:[%s2382_s1] sm:$0xff]   ;;  %v1846_v15 = vld [vmem:[%s2382_s1 + $0x10] sm:$0xff]   ;;  %v1839_v16 = vpack.i.bf16 %v25_v2, %v24_v0 }
   0x3   :  { %v1814_v8 = vtrunc.f32 %v23_v7  ;;  %1725 = vmatprep.subr.bf16.mxu0 %v1844_v9  ;;  %v1845_v14 = vld [vmem:[%s2382_s1 + $0x8] sm:$0xff]   ;;  %v1832_v17 = vpack.i.bf16 %v23_v7, %v22_v1  ;;  %v1847_v19 = vld [vmem:[%s2382_s1 + $0x18] ss:$0 sps:$4 sm:$0x11]  }
   0x4   :  { %v1817_v10 = vcvt.f32.s32 %v1816_v4  ;;  %v1813_v11 = vcvt.f32.s32 %v1812_v5  ;;  %v1819_v12 = vcvt.f32.s32 %v1818_v6  ;;  %1726 = vmatpush3.bf16.msra.mxu0 %v1844_v9  ;;  %v116_v20 = vsel %vm114_vm0, %v1847_v19, 0 }
   0x5   :  { %v1815_v13 = vcvt.f32.s32 %v1814_v8  ;;  %1727 = vmatprep.subr.bf16.mxu0 %v1845_v14 }
   0x6   :  { %39 = vperm.xlu1 %1837, %v1817_v10   ;;  %33 = vperm.xlu0 %1830, %v1813_v11  }
   0x8   :  { %1728 = vmatpush3.bf16.msra.mxu0 %v1845_v14 }
   0x9   :  { %1729 = vmatprep.subr.bf16.mxu0 %v1846_v15 }
   0xa   :  { %42 = vperm.xlu1 %1837, %v1819_v12   ;;  %36 = vperm.xlu0 %1830, %v1815_v13  }
   0xc   :  { %1730 = vmatpush3.bf16.msra.mxu0 %v1846_v15 }
   0xd   :  { %1811 = vmatprep.subr.msk.bf16.mxu0 %vm114_vm0, %v1847_v19 }
   0xe   :  { %1838 = vset.pattern.permute.xlu1 %v1890_v18  ;;  %1831 = vset.pattern.permute.xlu0 %v1890_v18 }
   0xf   :  { %1840 = vperm.xlu1 %1838, %v1839_v16   ;;  %1833 = vperm.xlu0 %1831, %v1832_v17  }
  0x10   :  { %10 = vsyncpa [#allocation3], 0  ;;  %1732 = vmatpush3.bf16.msra.mxu0 %v116_v20  ;;  %v30_v23 = vlaneseq  ;;  %vm107_vm1 = vcmask 408576   ;;  %v1848_v39 = vld [vmem:[%s2383_s2 + $0x10] sm:$0xff]   ;;  %v1849_v40 = vld [vmem:[%s2383_s2 + $0x18] sm:$0xff]   ;;  %s1894_s1 = smov 96  }
  0x11   :  { %1737 = vmatprep.subr.bf16.mxu1 %v1848_v39  ;;  %v1966_v41 = vld [vmem:[%s2383_s2] sm:$0xff]   ;;  %v1891_v42 = vmov 1966171168   ;;  %vm277_vm6 = vsmask.f32 256  ;;  %s1896_s15 = smov 64  }
  0x12   :  { %v31_v26 = vand.u32 127, %v30_v23  ;;  %1738 = vmatpush3.bf16.msra.mxu1 %v1848_v39  ;;  %v177_v43 = vunpack.c.l.s4 %v1891_v42  ;;  %vm278_vm7 = vsmask.f32 1284  ;;  %v1969_v45 = vshrl.u32 %v30_v23, 7  ;;  %v1974_v46 = vld [vmem:[%s2385_s4] ss:$0 sm:$0xff] }
  0x13   :  { %1739 = vmatprep.subr.bf16.mxu1 %v1849_v40  ;;  %vm279_vm8 = vmor %vm277_vm6, %vm278_vm7  ;;  %vm280_vm9 = vsmask.f32 2312  ;;  %vm282_vm11 = vsmask.f32 3340  ;;  %vm284_vm13 = vsmask.f32 4368  ;;  %1503 = vrot.lane.b32.xlu1 %v1974_v46, %s1894_s1 }
  0x14   :  { %v178_v44 = vunpack.c.0.s8 %v177_v43  ;;  %vm281_vm10 = vmor %vm279_vm8, %vm280_vm9  ;;  %vm286_vm15 = vsmask.f32 5396  ;;  %vm1893_vm6 = vmmov 0   ;;  %vm1444_vm7 = vcmask 392192   ;;  %1567 = vrot.lane.b32.xlu0 %v1974_v46, %s1896_s15  ;;  %s1898_s16 = smov [#allocation2]  }
  0x15   :  { %vm283_vm12 = vmor %vm281_vm10, %vm282_vm11  ;;  %vm1446_vm8 = vcmask 390144   ;;  %vm1481_vm9 = vcmask 1041409   ;;  %s1627_s17 = sshll.u32 %s1898_s16, 4  ;;  %vm1618_vm10 = vcmask 523264   ;;  %s1628_s17 = int_to_ptr.vmem [resolvable:$true] %s1627_s17 }
  0x16   :  { %1740 = vmatpush3.bf16.msra.mxu1 %v1849_v40  ;;  %v1977_v48 = vsub.s32 %v178_v44, %v1969_v45  ;;  %vm285_vm14 = vmor %vm283_vm12, %vm284_vm13  ;;  %s1865_s18 = scalar_lea.vmem %s1628_s17, 32  ;;  %p1870_p1 = scmp.lt.s32.totalorder %s1628_s17, %s1628_s17 }
  0x17   :  { %1745 = vmatprep.subr.bf16.mxu1 %v1966_v41  ;;  %vm287_vm0 = vmor %vm285_vm14, %vm286_vm15  ;;  %p1866_p0 = scmp.ne.s32.totalorder %s1628_s17, %s1865_s18  ;;  %p1871_p2 = scmp.lt.s32.totalorder %s1865_s18, %s1865_s18 }
  0x18   :  { %v894_v53 = vrot.slane %v1889_v3, %v1977_v48 }
  0x19   :  { %p1872_p3 = por %p1871_p2, %p1870_p1 }
  0x1a   :  { %v1986_v61 = vrot.slane %v894_v53, %v1977_v48 }
  0x1b   :  { %p1873_p4 = pnand %p1872_p3, %p1866_p0 }
  0x1c   :  { %v907_v2 = vshll.u32 %v1986_v61, 16 }
  0x85   :  { %v40_v21 = vpop.permute.xlu1 %39  ;;  %v34_v22 = vpop.permute.xlu0 %33 }
  0x86   :  { %vm46_vm2 = vcmp.eq.s32.totalorder %v31_v26, %v40_v21  ;;  %vm44_vm3 = vcmp.eq.s32.totalorder %v31_v26, %v34_v22 }
  0x89   :  { %v43_v24 = vpop.permute.xlu1 %42  ;;  %v37_v25 = vpop.permute.xlu0 %36 }
  0x8a   :  { %vm47_vm4 = vcmp.eq.s32.totalorder %v31_v26, %v43_v24  ;;  %vm45_vm5 = vcmp.eq.s32.totalorder %v31_v26, %v37_v25 }
  0x8e   :  { %v1841_v27 = vpop.permute.xlu1 %1840  ;;  %v1834_v28 = vpop.permute.xlu0 %1833 }
  0x8f   :  { %v1843_v29 = vunpack.i.h.bf16 %v1841_v27  ;;  %v1842_v30 = vunpack.i.l.bf16 %v1841_v27  ;;  %v1836_v31 = vunpack.i.h.bf16 %v1834_v28  ;;  %v1835_v32 = vunpack.i.l.bf16 %v1834_v28 }
  0x91   :  { %v71_v33 = vsel %vm47_vm4, %v1843_v29, 0.0  ;;  %v70_v34 = vsel %vm46_vm2, %v1842_v30, 0.0  ;;  %v68_v35 = vsel %vm44_vm3, %v1835_v32, 0.0  ;;  %v69_v36 = vsel %vm45_vm5, %v1836_v31, 0.0 }
  0x92   :  { %v73_v37 = vpack.c.bf16 %v71_v33, %v70_v34  ;;  %v72_v38 = vpack.c.bf16 %v69_v36, %v68_v35  ;;  %vm290_vm2 = vsmask.f32 7452  ;;  %vm511_vm5 = vcmask 261120  }
  0x94   :  { %1733 = vmatprep.mubr.msk.bf16.mxu0 %vm107_vm1, %v72_v38 }
  0x95   :  { %1734 = vmatmul.mubr.msk.bf16.vlgmr.msra.gmra.mrb[0].mxu0 %vm107_vm1, %v73_v37  ;;  %vm288_vm1 = vsmask.f32 6424 }
  0x96   :  { %vm289_vm3 = vmor %vm287_vm0, %vm288_vm1 }
  0x97   :  { %vm2048_vm4 = vmor %vm289_vm3, %vm290_vm2 }
 0x168   :  { %v1735_v47 = vpop.f32.mrb[0].mxu0 }
 0x169   :  { %v161_v49 = vadd.f32 %v1735_v47, %v1974_v46  ;;  %v152_v50 = vpop.f32.mrb[1].mxu0 }
 0x16a   :  { %v153_v51 = vadd.f32 %v1974_v46, %v152_v50  ;;  %v1736_v52 = vpop.f32.mrb[2].mxu0 }
 0x16b   :  { %v164_v54 = vadd.f32 %v1736_v52, %v1974_v46  ;;  %v155_v55 = vpop.f32.mrb[3].mxu0  ;;  %v169_v57 = vmax.f32 %v161_v49, 0.0 }
 0x16c   :  { %v156_v56 = vadd.f32 %v1974_v46, %v155_v55  ;;  %v167_v59 = vmax.f32 %v153_v51, 0.0 }
 0x16d   :  { %v170_v58 = vmax.f32 %v164_v54, 0.0 }
 0x16e   :  { %v168_v60 = vmax.f32 %v156_v56, 0.0 }
 0x16f   :  { %v172_v62 = vpack.c.bf16 %v170_v58, %v169_v57  ;;  %v1643_v63 = vpack.c.bf16 %v170_v58, %v170_v58 }
 0x170   :  { %v171_v0 = vpack.c.bf16 %v168_v60, %v167_v59  ;;  %v1642_v1 = vpack.c.bf16 %v168_v60, %v168_v60 }
 0x171   :  { %v230_v3 = vrot.slane %v172_v62, %v1977_v48  ;;  %v237_v4 = vrot.slane %v1643_v63, %v1977_v48 }
 0x172   :  { %v182_v5 = vrot.slane %v171_v0, %v1977_v48  ;;  %v189_v6 = vrot.slane %v1642_v1, %v1977_v48 }
 0x173   :  { %v238_v7 = vcombine.high %v230_v3, %v230_v3  ;;  %v239_v8 = vcombine.high %v237_v4, %v237_v4  ;;  %v1994_v9 = vrot.slane %v230_v3, %v1977_v48  ;;  %v1997_v10 = vrot.slane %v237_v4, %v1977_v48 }
 0x174   :  { %v190_v11 = vcombine.high %v182_v5, %v182_v5  ;;  %v191_v12 = vcombine.high %v189_v6, %v189_v6  ;;  %v2000_v13 = vrot.slane %v182_v5, %v1977_v48  ;;  %v2003_v14 = vrot.slane %v189_v6, %v1977_v48 }
 0x175   :  { %v2006_v15 = vrot.slane %v238_v7, %v1977_v48  ;;  %v2009_v16 = vrot.slane %v239_v8, %v1977_v48  ;;  %v2013_v17 = vcombine.high %v1994_v9, %v1994_v9  ;;  %v350_v18 = vshrl.u32 %v1994_v9, 16 }
 0x176   :  { %v2017_v19 = vrot.slane %v190_v11, %v1977_v48  ;;  %v2020_v20 = vrot.slane %v191_v12, %v1977_v48  ;;  %v2024_v21 = vcombine.high %v2000_v13, %v2000_v13  ;;  %v2028_v22 = vcombine.high %v2003_v14, %v2003_v14 }
 0x177   :  { %v1667_v23 = vcombine.high %v1994_v9, %v2006_v15  ;;  %v293_v24 = vshrl.u32 %v2000_v13, 16  ;;  %v322_v25 = vshll.u32 %v2003_v14, 16  ;;  %v325_v26 = vshrl.u32 %v2003_v14, 16 }
 0x178   :  { %v567_v27 = vcombine.low %v2000_v13, %v2017_v19  ;;  %v1662_v28 = vcombine.high %v2000_v13, %v2017_v19  ;;  %v2041_v29 = vcombine.high %v2017_v19, %v2017_v19  ;;  %v2045_v30 = vcombine.high %v2020_v20, %v2020_v20 }
 0x179   :  { %v2053_v32 = vrot.slane %v1667_v23, %v1977_v48  ;;  %v298_v33 = vshll.u32 %v2017_v19, 16  ;;  %v301_v34 = vshrl.u32 %v2017_v19, 16  ;;  %v306_v35 = vshll.u32 %v2024_v21, 16 }
 0x17a   :  { %v309_v36 = vshrl.u32 %v2024_v21, 16  ;;  %v314_v37 = vshll.u32 %v2041_v29, 16  ;;  %v317_v38 = vshrl.u32 %v2041_v29, 16  ;;  %v330_v39 = vshll.u32 %v2020_v20, 16 }
 0x17b   :  { %v300_v40 = vsel %vm2048_vm4, %v293_v24, %v298_v33  ;;  %v2066_v42 = vsel %vm2048_vm4, %v301_v34, %v306_v35  ;;  %v333_v43 = vshrl.u32 %v2020_v20, 16  ;;  %v338_v44 = vshll.u32 %v2028_v22, 16 }
 0x17c   :  { %v2072_v47 = vsel %vm2048_vm4, %v309_v36, %v314_v37  ;;  %v2076_v49 = vsel %vm2048_vm4, %v317_v38, %v322_v25  ;;  %v2080_v50 = vsel %vm2048_vm4, %v325_v26, %v330_v39  ;;  %v341_v51 = vshrl.u32 %v2028_v22, 16 }
 0x17d   :  { %v2085_v52 = vsel %vm2048_vm4, %v333_v43, %v338_v44  ;;  %v346_v53 = vshll.u32 %v2045_v30, 16  ;;  %v355_v54 = vshll.u32 %v2006_v15, 16  ;;  %v410_v55 = vcombine.low %v300_v40, %v2066_v42 }
 0x17e   :  { %v411_v56 = vcombine.low %v2072_v47, %v2076_v49  ;;  %v412_v57 = vcombine.low %v2080_v50, %v2085_v52  ;;  %v919_v58 = vcombine.low %v2066_v42, %v2072_v47  ;;  %v920_v59 = vcombine.low %v2076_v49, %v2080_v50 }
 0x17f   :  { %v2100_v60 = vsel %vm2048_vm4, %v341_v51, %v346_v53  ;;  %v357_v62 = vsel %vm2048_vm4, %v350_v18, %v355_v54  ;;  %v420_v63 = vrot.slane %v410_v55, %v1977_v48  ;;  %v269_v0 = vcombine.high %v1997_v10, %v1997_v10 }
 0x180   :  { %v413_v1 = vcombine.low %v2100_v60, %v357_v62  ;;  %v427_v3 = vrot.slane %v411_v56, %v1977_v48  ;;  %v434_v4 = vrot.slane %v412_v57, %v1977_v48  ;;  %v921_v5 = vcombine.low %v2085_v52, %v2100_v60 }
 0x181   :  { %v270_v6 = vcombine.high %v2006_v15, %v2006_v15  ;;  %v2116_v7 = vcombine.high %v2009_v16, %v2009_v16  ;;  %v358_v8 = vshrl.u32 %v2006_v15, 16  ;;  %v363_v11 = vshll.u32 %v2013_v17, 16 }
 0x182   :  { %v441_v12 = vrot.slane %v413_v1, %v1977_v48  ;;  %v442_v18 = vcombine.low %v420_v63, %v427_v3  ;;  %v366_v23 = vshrl.u32 %v2013_v17, 16  ;;  %v379_v24 = vshll.u32 %v1997_v10, 16 }
 0x183   :  { %v2125_v25 = vsel %vm2048_vm4, %v358_v8, %v363_v11  ;;  %v371_v26 = vshll.u32 %v270_v6, 16  ;;  %v374_v33 = vshrl.u32 %v270_v6, 16  ;;  %v382_v34 = vshrl.u32 %v1997_v10, 16 }
 0x184   :  { %v443_v35 = vcombine.low %v434_v4, %v441_v12  ;;  %v450_v36 = vrot.slane %v442_v18, %v1977_v48  ;;  %v387_v37 = vshll.u32 %v2009_v16, 16  ;;  %v390_v38 = vshrl.u32 %v2009_v16, 16 }
 0x185   :  { %v2133_v39 = vsel %vm2048_vm4, %v366_v23, %v371_v26  ;;  %v2137_v40 = vsel %vm2048_vm4, %v374_v33, %v379_v24  ;;  %v395_v43 = vshll.u32 %v269_v0, 16  ;;  %v398_v44 = vshrl.u32 %v269_v0, 16 }
 0x186   :  { %v457_v51 = vrot.slane %v443_v35, %v1977_v48  ;;  %v389_v53 = vsel %vm2048_vm4, %v382_v34, %v387_v37  ;;  %v403_v54 = vshll.u32 %v2116_v7, 16  ;;  %v459_v55 = vcombine.low %v2125_v25, %v2133_v39 }
 0x187   :  { %v397_v56 = vsel %vm2048_vm4, %v390_v38, %v395_v43  ;;  %v460_v57 = vcombine.low %v2137_v40, %v389_v53  ;;  %v910_v62 = vshrl.u32 %v2116_v7, 16  ;;  %v968_v63 = vcombine.low %v2133_v39, %v2137_v40 }
 0x188   :  { %v458_v1 = vcombine.low %v450_v36, %v457_v51  ;;  %v2153_v3 = vsel %vm2048_vm4, %v398_v44, %v403_v54  ;;  %v468_v4 = vrot.slane %v459_v55, %v1977_v48  ;;  %v969_v8 = vcombine.low %v389_v53, %v397_v56 }
 0x189   :  { %v461_v11 = vcombine.low %v397_v56, %v2153_v3  ;;  %v475_v12 = vrot.slane %v460_v57, %v1977_v48  ;;  %v2162_v18 = vsel %vm2048_vm4, %v910_v62, %v907_v2  ;;  %v569_v23 = vcombine.low %v2003_v14, %v2020_v20  ;;  %v1851_v62 = vld [vmem:[%s2383_s2 + $0x8] sm:$0xff]  }
 0x18a   :  { %1741 = vmatprep.mubr.msk.bf16.mxu1 %vm511_vm5, %v458_v1  ;;  %v970_v24 = vcombine.low %v2153_v3, %v2162_v18  ;;  %v2170_v26 = vrot.slane %v969_v8, %v1977_v48  ;;  %v570_v33 = vcombine.low %v2028_v22, %v1994_v9  ;;  %v577_v34 = vrot.slane %v567_v27, %v1977_v48 }
 0x18b   :  { %v482_v35 = vrot.slane %v461_v11, %v1977_v48  ;;  %v483_v36 = vcombine.low %v468_v4, %v475_v12  ;;  %v2183_v37 = vrot.slane %v1662_v28, %v1977_v48  ;;  %v2186_v38 = vrot.slane %v569_v23, %v1977_v48 }
 0x18c   :  { %v598_v43 = vrot.slane %v570_v33, %v1977_v48  ;;  %v616_v9 = vcombine.low %v2006_v15, %v2013_v17  ;;  %v617_v44 = vcombine.low %v270_v6, %v1997_v10  ;;  %v618_v27 = vcombine.low %v2009_v16, %v269_v0 }
 0x18d   :  { %v490_v51 = vrot.slane %v483_v36, %v1977_v48  ;;  %v497_v53 = vrot.slane %v482_v35, %v1977_v48  ;;  %v599_v13 = vcombine.low %v577_v34, %v2183_v37  ;;  %v727_v28 = vcombine.low %v2017_v19, %v2024_v21  ;;  %v1852_v34 = vld [vmem:[%s2383_s2 + $0x20] sm:$0xff]  }
 0x18e   :  { %v600_v54 = vcombine.low %v2186_v38, %v598_v43  ;;  %v625_v55 = vrot.slane %v616_v9, %v1977_v48  ;;  %v2201_v56 = vrot.slane %v617_v44, %v1977_v48  ;;  %v2204_v6 = vrot.slane %v618_v27, %v1977_v48 }
 0x18f   :  { %v498_v0 = vcombine.low %v490_v51, %v497_v53  ;;  %v607_v57 = vrot.slane %v599_v13, %v1977_v48  ;;  %v728_v19 = vcombine.low %v2041_v29, %v2003_v14  ;;  %v729_v21 = vcombine.low %v2020_v20, %v2028_v22 }
 0x190   :  { %v614_v1 = vrot.slane %v600_v54, %v1977_v48  ;;  %v640_v3 = vcombine.low %v625_v55, %v2201_v56  ;;  %v654_v4 = vrot.slane %v2204_v6, %v1977_v48  ;;  %v730_v8 = vcombine.low %v2045_v30, %v2006_v15 }
 0x191   :  { %1742 = vmatmul.mubr.msk.bf16.vlgmr.msra.gmra.mrb[0].mxu1 %vm511_vm5, %v498_v0  ;;  %v737_v11 = vrot.slane %v727_v28, %v1977_v48  ;;  %v744_v12 = vrot.slane %v728_v19, %v1977_v48  ;;  %v751_v29 = vrot.slane %v729_v21, %v1977_v48  ;;  %v777_v22 = vcombine.low %v1997_v10, %v2009_v16  ;;  %v1855_v21 = vld [vmem:[%s2383_s2 + $0x38] sm:$0xff]  }
 0x192   :  { %1746 = vmatpush3.bf16.msra.mxu1 %v1966_v41  ;;  %v615_v18 = vcombine.low %v607_v57, %v614_v1  ;;  %v647_v23 = vrot.slane %v640_v3, %v1977_v48  ;;  %v758_v33 = vrot.slane %v730_v8, %v1977_v48  ;;  %v1668_v15 = vcombine.high %v1997_v10, %v2009_v16  ;;  %v1857_v1 = vld [vmem:[%s2383_s2 + $0x48] sm:$0xff]   ;;  %v1860_v3 = vld [vmem:[%s2384_s3] sm:$0xff]  }
 0x193   :  { %1747 = vmatprep.subr.bf16.mxu1 %v1851_v62  ;;  %v759_v35 = vcombine.low %v737_v11, %v744_v12  ;;  %v792_v36 = vrot.slane %v777_v22, %v1977_v48  ;;  %v902_v43 = vshrl.u32 %v2045_v30, 16  ;;  %v929_v41 = vrot.slane %v919_v58, %v1977_v48  ;;  %v1861_v8 = vld [vmem:[%s2384_s3 + $0x8] sm:$0xff]   ;;  %v1862_v11 = vld [vmem:[%s2384_s3 + $0x10] sm:$0xff]  }
 0x194   :  { %1749 = vmatprep.mubr.msk.bf16.mxu1 %vm511_vm5, %v615_v18  ;;  %v655_v9 = vcombine.low %v647_v23, %v654_v4  ;;  %v760_v44 = vcombine.low %v751_v29, %v758_v33  ;;  %v799_v10 = vrot.slane %v1668_v15, %v1977_v48  ;;  %v936_v16 = vrot.slane %v920_v59, %v1977_v48  ;;  %v1211_v18 = vld [vmem:[%s2385_s4 + $0x1] sm:$0xff] }
 0x195   :  { %v767_v27 = vrot.slane %v759_v35, %v1977_v48  ;;  %v800_v30 = vcombine.low %v2053_v32, %v792_v36  ;;  %v909_v42 = vsel %vm2048_vm4, %v902_v43, %v907_v2  ;;  %v943_v47 = vrot.slane %v921_v5, %v1977_v48  ;;  %v1212_v35 = vld [vmem:[%s2385_s4 + $0x9] sm:$0x3f] }
 0x196   :  { %1748 = vmatpush3.bf16.msra.mxu1 %v1851_v62  ;;  %v774_v58 = vrot.slane %v760_v44, %v1977_v48  ;;  %v814_v49 = vrot.slane %v799_v10, %v1977_v48  ;;  %v922_v50 = vcombine.low %v909_v42, %v2125_v25  ;;  %v951_v59 = vcombine.low %v929_v41, %v936_v16 }
 0x197   :  { %1753 = vmatprep.subr.bf16.mxu1 %v1852_v34  ;;  %v807_v32 = vrot.slane %v800_v30, %v1977_v48  ;;  %v977_v2 = vrot.slane %v968_v63, %v1977_v48  ;;  %v991_v31 = vrot.slane %v970_v24, %v1977_v48  ;;  %v1679_v52 = vcombine.high %v2003_v14, %v2020_v20 }
 0x198   :  { %v775_v60 = vcombine.low %v767_v27, %v774_v58  ;;  %v950_v5 = vrot.slane %v922_v50, %v1977_v48  ;;  %v1084_v25 = vcombine.low %v1986_v61, %v2013_v17  ;;  %v959_v53 = vrot.slane %v951_v59, %v1977_v48  ;;  %v1853_v17 = vld [vmem:[%s2383_s2 + $0x28] sm:$0xff]  }
 0x199   :  { %v815_v51 = vcombine.low %v807_v32, %v814_v49  ;;  %v992_v13 = vcombine.low %v977_v2, %v2170_v26  ;;  %v1091_v28 = vrot.slane %v1679_v52, %v1977_v48  ;;  %v1099_v63 = vcombine.low %v2183_v37, %v2186_v38 }
 0x19a   :  { %v952_v39 = vcombine.low %v943_v47, %v950_v5  ;;  %v1098_v40 = vrot.slane %v1084_v25, %v1977_v48  ;;  %v1116_v14 = vcombine.low %v2116_v7, %v1986_v61  ;;  %v1006_v24 = vrot.slane %v991_v31, %v1977_v48 }
 0x19b   :  { %v999_v20 = vrot.slane %v992_v13, %v1977_v48  ;;  %v1124_v26 = vcombine.low %v2201_v56, %v2204_v6  ;;  %v1107_v0 = vrot.slane %v1099_v63, %v1977_v48  ;;  %v1854_v6 = vld [vmem:[%s2383_s2 + $0x30] sm:$0xff]   ;;  %v1892_v4 = vmov 0.0  }
 0x19c   :  { %v966_v54 = vrot.slane %v952_v39, %v1977_v48  ;;  %v1100_v55 = vcombine.low %v1091_v28, %v1098_v40  ;;  %v1123_v37 = vrot.slane %v1116_v14, %v1977_v48  ;;  %1777 = vmatprep.subr.bf16.mxu0 %v1892_v4  ;;  %1783 = vmatprep.mubr.msk.bf16.mxu0 %vm1893_vm6, %v1892_v4  ;;  %v1895_v12 = vmov 1983009808  }
 0x19d   :  { %1750 = vmatmul.mubr.msk.bf16.vlgmr.msra.gmra.mrb[0].mxu1 %vm511_vm5, %v655_v9  ;;  %v1007_v61 = vcombine.low %v999_v20, %v1006_v24  ;;  %v1131_v7 = vrot.slane %v1124_v26, %v1977_v48  ;;  %1778 = vmatpush3.bf16.msra.mxu0 %v1860_v3  ;;  %v1219_v29 = vunpack.c.l.s4 %v1895_v12  ;;  %v1292_v33 = vcombine.high %v1211_v18, %v1211_v18 }
 0x19e   :  { %1754 = vmatpush3.bf16.msra.mxu1 %v1852_v34  ;;  %1757 = vmatprep.mubr.msk.bf16.mxu1 %vm511_vm5, %v775_v60  ;;  %v967_v38 = vcombine.low %v959_v53, %v966_v54  ;;  %v1114_v57 = vrot.slane %v1100_v55, %v1977_v48  ;;  %v1138_v56 = vrot.slane %v1123_v37, %v1977_v48  ;;  %v1856_v48 = vld [vmem:[%s2383_s2 + $0x40] sm:$0xff]  }
 0x19f   :  { %1755 = vmatprep.subr.bf16.mxu1 %v1853_v17  ;;  %1779 = vmatprep.subr.bf16.mxu0 %v1892_v4  ;;  %v1220_v22 = vunpack.c.0.s8 %v1219_v29  ;;  %v1309_v36 = vcombine.high %v1212_v35, %v1212_v35 }
 0x1a0   :  { %v1115_v62 = vcombine.low %v1107_v0, %v1114_v57  ;;  %v1139_v19 = vcombine.low %v1131_v7, %v1138_v56 }
 0x1a1   :  { %1780 = vmatpush3.bf16.msra.mxu0 %v1861_v8  ;;  %v2330_v23 = vsub.s32 %v1220_v22, %v1969_v45 }
 0x1a2   :  { %1756 = vmatpush3.bf16.msra.mxu1 %v1853_v17  ;;  %1781 = vmatprep.subr.bf16.mxu0 %v1892_v4 }
 0x1a3   :  { %1761 = vmatprep.subr.bf16.mxu1 %v1854_v6  ;;  %v1299_v15 = vrot.slane %v1211_v18, %v2330_v23  ;;  %v1306_v34 = vrot.slane %v1292_v33, %v2330_v23  ;;  %v1316_v9 = vrot.slane %v1212_v35, %v2330_v23  ;;  %v1323_v47 = vrot.slane %v1309_v36, %v2330_v23 }
 0x1a5   :  { %1782 = vmatpush3.bf16.msra.mxu0 %v1862_v11  ;;  %v1307_v43 = vcombine.high %v1299_v15, %v1299_v15  ;;  %v1308_v16 = vcombine.high %v1306_v34, %v1306_v34  ;;  %v1324_v60 = vcombine.high %v1316_v9, %v1316_v9 }
 0x1a6   :  { %1787 = vmatprep.subr.bf16.mxu0 %v1892_v4 }
 0x1a9   :  { %1758 = vmatmul.mubr.msk.bf16.vlgmr.msra.gmra.mrb[0].mxu1 %vm511_vm5, %v815_v51 }
 0x1aa   :  { %1762 = vmatpush3.bf16.msra.mxu1 %v1854_v6  ;;  %1765 = vmatprep.mubr.msk.bf16.mxu1 %vm511_vm5, %v967_v38 }
 0x1ab   :  { %1763 = vmatprep.subr.bf16.mxu1 %v1855_v21 }
 0x1ae   :  { %1764 = vmatpush3.bf16.msra.mxu1 %v1855_v21 }
 0x1af   :  { %1769 = vmatprep.subr.bf16.mxu1 %v1856_v48 }
 0x1b5   :  { %1766 = vmatmul.mubr.msk.bf16.vlgmr.msra.gmra.mrb[0].mxu1 %vm511_vm5, %v1007_v61 }
 0x1b6   :  { %1770 = vmatpush3.bf16.msra.mxu1 %v1856_v48  ;;  %1773 = vmatprep.mubr.msk.bf16.mxu1 %vm511_vm5, %v1115_v62 }
 0x1b7   :  { %1771 = vmatprep.subr.bf16.mxu1 %v1857_v1 }
 0x1ba   :  { %1772 = vmatpush3.bf16.msra.mxu1 %v1857_v1 }
 0x1c1   :  { %1774 = vmatmul.mubr.msk.bf16.vlgmr.msra.gmra.mrb[0].mxu1 %vm511_vm5, %v1139_v19 }
 0x294   :  { %v1775_v41 = vpop.f32.mrb[0].mxu1 }
 0x295   :  { %v1251_v44 = vcombine.high %v1775_v41, %v1775_v41  ;;  %v1258_v10 = vrot.slane %v1775_v41, %v2330_v23  ;;  %v1192_v45 = vpop.f32.mrb[1].mxu1 }
 0x296   :  { %v1217_v27 = vcombine.high %v1192_v45, %v1192_v45  ;;  %v1224_v30 = vrot.slane %v1192_v45, %v2330_v23  ;;  %v1776_v42 = vpop.f32.mrb[2].mxu1 }
 0x297   :  { %v1265_v58 = vrot.slane %v1251_v44, %v2330_v23  ;;  %v1266_v49 = vcombine.high %v1258_v10, %v1258_v10  ;;  %v1340_v50 = vadd.f32 %v1307_v43, %v1258_v10  ;;  %v1274_v59 = vrot.slane %v1776_v42, %v2330_v23  ;;  %v1195_v32 = vpop.f32.mrb[3].mxu1 }
 0x298   :  { %v1231_v2 = vrot.slane %v1217_v27, %v2330_v23  ;;  %v1232_v31 = vcombine.high %v1224_v30, %v1224_v30  ;;  %v1332_v52 = vadd.f32 %v1299_v15, %v1224_v30  ;;  %v1234_v53 = vcombine.high %v1195_v32, %v1195_v32 }
 0x299   :  { %v1267_v5 = vcombine.high %v1265_v58, %v1265_v58  ;;  %v1341_v25 = vadd.f32 %v1306_v34, %v1266_v49  ;;  %v1342_v51 = vadd.f32 %v1308_v16, %v1265_v58  ;;  %v1275_v17 = vcombine.high %v1274_v59, %v1274_v59 }
 0x29a   :  { %v1233_v13 = vcombine.high %v1231_v2, %v1231_v2  ;;  %v1333_v28 = vadd.f32 %v1307_v43, %v1232_v31  ;;  %v1334_v39 = vadd.f32 %v1306_v34, %v1231_v2  ;;  %v1346_v40 = vmax.f32 %v1332_v52, 0.0 }
 0x29b   :  { %v1355_v63 = vmax.f32 %v1341_v25, 0.0  ;;  %v1356_v14 = vmax.f32 %v1342_v51, 0.0  ;;  %v1343_v20 = vadd.f32 %v1316_v9, %v1267_v5  ;;  %v1344_v55 = vadd.f32 %v1324_v60, %v1274_v59 }
 0x29c   :  { %v1335_v24 = vadd.f32 %v1308_v16, %v1233_v13  ;;  %v1347_v26 = vmax.f32 %v1333_v28, 0.0  ;;  %v1348_v54 = vmax.f32 %v1334_v39, 0.0  ;;  %v1345_v37 = vadd.f32 %v1323_v47, %v1275_v17 }
 0x29d   :  { %v1408_v0 = vcombine.low %v1355_v63, %v1356_v14  ;;  %v1357_v61 = vmax.f32 %v1343_v20, 0.0  ;;  %v1241_v7 = vrot.slane %v1195_v32, %v2330_v23  ;;  %v1358_v56 = vmax.f32 %v1344_v55, 0.0  ;;  %v1864_v55 = vld [vmem:[%s2384_s3 + $0x20] sm:$0xff]  }
 0x29e   :  { %v1349_v38 = vmax.f32 %v1335_v24, 0.0  ;;  %v1374_v57 = vcombine.low %v1346_v40, %v1347_v26  ;;  %v1248_v6 = vrot.slane %v1234_v53, %v2330_v23  ;;  %v1359_v19 = vmax.f32 %v1345_v37, 0.0  ;;  %v1863_v26 = vld [vmem:[%s2384_s3 + $0x18] sm:$0xff]   ;;  %s1897_s3 = smov 32  }
 0x29f   :  { %v1422_v62 = vrot.slane %v1408_v0, %v2330_v23  ;;  %v1249_v21 = vcombine.high %v1241_v7, %v1241_v7  ;;  %v1336_v48 = vadd.f32 %v1316_v9, %v1241_v7  ;;  %v1424_v8 = vcombine.low %v1357_v61, %v1358_v56  ;;  %v1504_v0 = vpop.permute.xlu1 %1503 }
 0x2a0   :  { %v1375_v1 = vcombine.low %v1348_v54, %v1349_v38  ;;  %v1382_v3 = vrot.slane %v1374_v57, %v2330_v23  ;;  %v1250_v11 = vcombine.high %v1248_v6, %v1248_v6  ;;  %v1438_v12 = vrot.slane %v1359_v19, %v2330_v23 }
 0x2a1   :  { %v1337_v29 = vadd.f32 %v1324_v60, %v1249_v21  ;;  %v1338_v22 = vadd.f32 %v1323_v47, %v1248_v6  ;;  %v1431_v33 = vrot.slane %v1424_v8, %v2330_v23  ;;  %v1350_v35 = vmax.f32 %v1336_v48, 0.0 }
 0x2a2   :  { %v1389_v18 = vrot.slane %v1375_v1, %v2330_v23  ;;  %v1339_v34 = vadd.f32 %v1299_v15, %v1250_v11  ;;  %v1354_v41 = vmax.f32 %v1340_v50, 0.0 }
 0x2a3   :  { %v1351_v36 = vmax.f32 %v1337_v29, 0.0  ;;  %v1352_v43 = vmax.f32 %v1338_v22, 0.0  ;;  %v1439_v44 = vcombine.low %v1431_v33, %v1438_v12 }
 0x2a4   :  { %v1353_v9 = vmax.f32 %v1339_v34, 0.0  ;;  %v1390_v10 = vcombine.low %v1382_v3, %v1389_v18 }
 0x2a5   :  { %v1391_v16 = vcombine.low %v1350_v35, %v1351_v36  ;;  %v1405_v45 = vrot.slane %v1352_v43, %v2330_v23  ;;  %v1456_v32 = vsel %vm1446_vm8, %v1439_v44, -inf }
 0x2a6   :  { %v1407_v27 = vcombine.low %v1353_v9, %v1354_v41  ;;  %v1445_v15 = vsel %vm1444_vm7, %v1390_v10, -inf }
 0x2a7   :  { %v1398_v30 = vrot.slane %v1391_v16, %v2330_v23 }
 0x2a8   :  { %v1415_v42 = vrot.slane %v1407_v27, %v2330_v23 }
 0x2a9   :  { %v1406_v47 = vcombine.low %v1398_v30, %v1405_v45 }
 0x2aa   :  { %v1423_v58 = vcombine.low %v1415_v42, %v1422_v62  ;;  %v1568_v62 = vpop.permute.xlu0 %1567 }
 0x2ab   :  { %v1447_v49 = vsel %vm1446_vm8, %v1406_v47, -inf }
 0x2ac   :  { %v1448_v59 = vmax.f32 %v1445_v15, %v1447_v49  ;;  %v1455_v50 = vsel %vm1444_vm7, %v1423_v58, -inf }
 0x2ad   :  { %v1457_v2 = vmax.f32 %v1455_v50, %v1456_v32 }
 0x2ae   :  { %v1449_v31 = vrot.slane %v1448_v59, 4 }
 0x2af   :  { %v1458_v52 = vrot.slane %v1457_v2, 4 }
 0x2b0   :  { %v1450_v60 = vmax.f32 %v1448_v59, %v1449_v31 }
 0x2b1   :  { %v1459_v5 = vmax.f32 %v1457_v2, %v1458_v52 }
 0x2b2   :  { %v1451_v25 = vrot.slane %v1450_v60, 2 }
 0x2b3   :  { %v1460_v51 = vrot.slane %v1459_v5, 2 }
 0x2b4   :  { %v1452_v53 = vmax.f32 %v1450_v60, %v1451_v25 }
 0x2b5   :  { %v1461_v13 = vmax.f32 %v1459_v5, %v1460_v51 }
 0x2b6   :  { %v1453_v23 = vrot.slane %v1452_v53, 1 }
 0x2b7   :  { %v1462_v28 = vrot.slane %v1461_v13, 1 }
 0x2b8   :  { %v1454_v39 = vmax.f32 %v1452_v53, %v1453_v23 }
 0x2b9   :  { %v1463_v40 = vmax.f32 %v1461_v13, %v1462_v28 }
 0x2ba   :  { %v1464_v63 = vpack.c.bf16 %v1454_v39, %v1454_v39 }
 0x2bb   :  { %v1465_v14 = vpack.c.bf16 %v1463_v40, %v1463_v40 }
 0x2bc   :  { %v1479_v17 = vunpack.c.l.b16 %v1464_v63 }
 0x2bd   :  { %v1480_v20 = vunpack.c.l.b16 %v1465_v14 }
 0x2bf   :  { %v1482_v24 = vsel %vm1481_vm9, %v1480_v20, %v1479_v17 }
 0x2c0   :  { %v1483_v54 = vpack.c.b16 %v1482_v24, %v1482_v24 }
 0x2c2   :  { %1784 = vmatmul.mubr.msk.bf16.vlgmr.msra.gmra.mrb[4].mxu0 %vm1444_vm7, %v1483_v54 }
 0x2c3   :  { %1788 = vmatpush3.bf16.msra.mxu0 %v1863_v26  ;;  %1791 = vmatprep.mubr.msk.bf16.mxu0 %vm1893_vm6, %v1892_v4 }
 0x2c4   :  { %1789 = vmatprep.subr.bf16.mxu0 %v1892_v4 }
 0x2c7   :  { %1790 = vmatpush3.bf16.msra.mxu0 %v1864_v55 }
 0x395   :  { %v1543_v37 = vpop.f32.mrb[4].mxu0 }
 0x396   :  { %v1544_v61 = vadd.f32 %v1543_v37, %v1504_v0  ;;  %v1785_v7 = vpop.f32.mrb[5].mxu0 }
 0x397   :  { %v1546_v38 = vpop.f32.mrb[6].mxu0 }
 0x398   :  { %v1549_v57 = vmax.f32 %v1544_v61, 0.0  ;;  %v1786_v56 = vpop.f32.mrb[7].mxu0 }
 0x39a   :  { %v1550_v6 = vpack.c.bf16 %v1549_v57, %v1549_v57 }
 0x39c   :  { %1792 = vmatmul.mubr.msk.bf16.vlgmr.msra.gmra.mrb[8].mxu0 %vm511_vm5, %v1550_v6 }
 0x46f   :  { %v1607_v4 = vpop.f32.mrb[8].mxu0 }
 0x470   :  { %v1608_v19 = vadd.f32 %v1607_v4, %v1568_v62  ;;  %v1793_v21 = vpop.f32.mrb[9].mxu0 }
 0x471   :  { %v1610_v48 = vpop.f32.mrb[10].mxu0 }
 0x472   :  { %1614 = vrot.lane.b32.xlu1 %v1608_v19, %s1897_s3  ;;  %v1794_v1 = vpop.f32.mrb[11].mxu0 }
 0x4e4   :  { %v1615_v46 = vpop.permute.xlu1 %1614 }
 0x4e5   :  { %v1617_v3 = vsel %vm511_vm5, %v1549_v57, %v1615_v46 }
 0x4e6   :  { %v1619_v8 = vsel %vm1618_vm10, %v1617_v3, 0.0 }
 0x4e7   :  { %1620 = vst [vmem:[#allocation2] sm:$0x3] %v1619_v8 }
 0x4e8   :  { %1876 = shalt.err (!%p1873_p4)
}
 0x4e9   :  { %s1877_s21 = scalar_lea.hbm %s2386_s5, 32 }
 0x4ea   :  { %p1878_p5 = scmp.ne.s32.totalorder %s2386_s5, %s1877_s21  ;;  %p1881_p6 = scmp.lt.u32.totalorder %s1877_s21, %s2386_s5 }
 0x4ec   :  { %p1883_p7 = pnand %p1881_p6, %p1878_p5 }
 0x4ee   :  { %1886 = shalt.err (!%p1883_p7)
}
 0x4ef   :  { %1630 = dma.vmem_to_hbm [thread:$0]  %s1628_s17, 32, %s2386_s5, [#allocation3]  }
 0x4f0   :  { %1887 = dma.done.wait [#allocation3], 32  }
 0x4f1   :  { %1888 = vsyncadd [#allocation3], 4294967264 }
 0x4f2   :  { %1634 = vsyncpa [#allocation3], 1 }

</bundles_post_ra>
